<compile_context>
chip_gen: v5e
topology: v5e:2x2
jax: 0.10.0
libtpu: 0.0.40
codegen_flags: <defaults>
</compile_context>

<pallas_src>
import functools
import math

import jax
import jax.numpy as jnp
from jax import lax
from jax.experimental import pallas as pl
from jax.experimental.pallas import tpu as pltpu


def _cdiv(a, b):
    return -(-a // b)


@functools.lru_cache(maxsize=None)
def _tpu_generation_params():
    """Returns (block_budget_bytes, vmem_limit_bytes, num_tensorcores)."""
    cap = None
    cores = None
    try:
        info = pltpu.get_tpu_info()
    except Exception:
        info = None
    if info is not None:
        for name in ("vmem_capacity_bytes", "vmem_bytes", "vmem_capacity"):
            v = getattr(info, name, None)
            try:
                v = int(v)
            except (TypeError, ValueError):
                v = None
            if v is not None and v > 0:
                cap = v
                break
        for name in ("num_cores", "tensorcores_per_chip", "cores_per_chip",
                     "core_count", "num_tensorcores"):
            v = getattr(info, name, None)
            try:
                v = int(v)
            except (TypeError, ValueError):
                v = None
            if v is not None and v > 0:
                cores = v
                break
    if cap is None:
        cap = 64 * 1024 * 1024                       # conservative: assume v7x-sized VMEM
    if cores is None:
        cores = 2 if cap <= 64 * 1024 * 1024 else 1  # v7x: 2 TCs/chip; v5e/v6e: 1
    if cap >= 96 * 1024 * 1024:
        # v5e / v6e: 128 MiB physical VMEM -> big streaming blocks.
        return 28 * 1024 * 1024, 64 * 1024 * 1024, cores
    # v7x (64 MiB per TC) or unknown: conservative, leave headroom for temporaries.
    return 14 * 1024 * 1024, 40 * 1024 * 1024, cores


# ---------------------------------------------------------------------------
# Tile selection (VMEM-budget driven, megacore-aware, temp-aware)
# ---------------------------------------------------------------------------
def _bytes_per_line(c, itemsize):
    # in+out blocks, double-buffered, at input dtype  +  ~4 block-sized f32
    # temporaries materialized inside the kernel (x, x*x, stat broadcasts, pre-cast out).
    return (2 * 2 * itemsize + 4 * 4) * c


def _pick_row_tile(rows, c, itemsize, block_budget, num_cores):
    sub = 8 if itemsize >= 4 else (16 if itemsize == 2 else 32)
    if rows <= sub:
        return rows                                   # full dim: always legal
    tile = max(sub, block_budget // _bytes_per_line(c, itemsize))
    tile = min(tile, rows)
    if num_cores > 1:                                 # >= 2 pipelined steps per core
        min_steps = 2 * num_cores
        if _cdiv(rows, tile) < min_steps and rows > min_steps * sub:
            tile = min(tile, _cdiv(rows, min_steps))
    if tile >= rows:
        return rows                                   # full-extent tile: no flooring
    return max(sub, (tile // sub) * sub)              # sublane-aligned


def _pick_spatial_tile(s, c, itemsize, batch, block_budget, num_cores):
    if s <= 128:
        return s                                      # full dim: always legal
    tile = max(128, block_budget // _bytes_per_line(c, itemsize))
    tile = min(tile, s)
    if num_cores > 1:                                 # >= 2 pipelined steps per core
        min_steps = 2 * num_cores
        if batch * _cdiv(s, tile) < min_steps:
            cand = _cdiv(s, _cdiv(min_steps, batch))
            if cand >= 128:
                tile = min(tile, cand)
    if tile >= s:
        return s                                      # full-extent tile: no flooring
    return max(128, (tile // 128) * 128)              # lane-aligned


# ---------------------------------------------------------------------------
# Kernels
# ---------------------------------------------------------------------------
def _ln_lane_kernel(x_ref, w_ref, b_ref, o_ref, *, eps, c):
    """channels_last: block (TR, C); normalize each row over the lane axis.

    Single-pass statistics: both cross-lane reductions issue from the same loaded x
    (no reduce -> subtract -> reduce dependency chain).
    """
    x = x_ref[...].astype(jnp.float32)                 # (TR, C)
    inv_c = 1.0 / c
    s1 = jnp.sum(x, axis=-1, keepdims=True)            # (TR, 1)
    s2 = jnp.sum(x * x, axis=-1, keepdims=True)        # (TR, 1)
    mean = s1 * inv_c
    var = s2 * inv_c - mean * mean                     # biased variance
    inv = lax.rsqrt(var + eps)                         # EUP slot
    w = w_ref[...].astype(jnp.float32)                 # (1, C)
    b = b_ref[...].astype(jnp.float32)                 # (1, C)
    o_ref[...] = ((x - mean) * inv * w + b).astype(o_ref.dtype)


def _ln_lane_packed_kernel(x_ref, w_ref, b_ref, o_ref, *, eps, c, g):
    """channels_last, lane-dense packing: g logical rows per physical row.

    Block is (TR, g*C) with g*C a multiple of 128 -> full-lane loads/stores even for
    C = 40/80/96/...  Per-segment statistics via tiny 0/1 block-diagonal selector
    matmuls on the otherwise-idle MXU (exact sums; HIGHEST precision keeps f32 accuracy).
    """
    gc = g * c
    x = x_ref[...].astype(jnp.float32)                 # (TR, g*C)
    # Selector S (gc, g): S[j, k] = 1 iff lane j belongs to segment k.
    lane = lax.broadcasted_iota(jnp.int32, (gc, g), 0) // c
    seg = lax.broadcasted_iota(jnp.int32, (gc, g), 1)
    sel = (lane == seg).astype(jnp.float32)
    # Transposed selector built directly (avoid an in-kernel transpose).
    lane_t = lax.broadcasted_iota(jnp.int32, (g, gc), 1) // c
    seg_t = lax.broadcasted_iota(jnp.int32, (g, gc), 0)
    sel_t = (lane_t == seg_t).astype(jnp.float32)

    hi = lax.Precision.HIGHEST
    inv_c = 1.0 / c
    s1 = jnp.dot(x, sel, precision=hi, preferred_element_type=jnp.float32)      # (TR, g)
    s2 = jnp.dot(x * x, sel, precision=hi, preferred_element_type=jnp.float32)  # (TR, g)
    mean = s1 * inv_c
    var = s2 * inv_c - mean * mean                     # biased variance
    inv = lax.rsqrt(var + eps)
    mean_b = jnp.dot(mean, sel_t, precision=hi, preferred_element_type=jnp.float32)  # (TR, gc)
    inv_b = jnp.dot(inv, sel_t, precision=hi, preferred_element_type=jnp.float32)    # (TR, gc)
    w = w_ref[...].astype(jnp.float32)                 # (1, g*C)
    b = b_ref[...].astype(jnp.float32)                 # (1, g*C)
    o_ref[...] = ((x - mean_b) * inv_b * w + b).astype(o_ref.dtype)


def _ln_sublane_kernel(x_ref, w_ref, b_ref, o_ref, *, eps):
    """channels_first: block (C, TILE_S); normalize each spatial column over C (sublanes)."""
    x = x_ref[...].astype(jnp.float32)                 # (C, TS)
    mean = jnp.mean(x, axis=0, keepdims=True)          # (1, TS)  sublane reduce (XLU)
    xc = x - mean
    var = jnp.mean(xc * xc, axis=0, keepdims=True)     # biased variance
    inv = lax.rsqrt(var + eps)
    w = w_ref[...].astype(jnp.float32)                 # (C, 1)
    b = b_ref[...].astype(jnp.float32)                 # (C, 1)
    o_ref[...] = (xc * inv * w + b).astype(o_ref.dtype)


# ---------------------------------------------------------------------------
# Wrappers
# ---------------------------------------------------------------------------
def _layernorm_channels_last(x, weight, bias, eps):
    c = x.shape[-1]
    lead = x.shape[:-1]
    rows = math.prod(lead) if lead else 1
    itemsize = jnp.dtype(x.dtype).itemsize
    block_budget, vmem_limit, num_cores = _tpu_generation_params()

    # Lane-dense packing when C is not a multiple of 128: fold g rows into one
    # physical row (free contiguous reshape) so g*C is a multiple of 128.
    g = 1
    if c % 128 != 0 and c >= 8:
        cand = math.lcm(c, 128) // c
        if 2 <= cand <= 16 and rows % cand == 0 and rows >= cand:
            g = cand

    if g > 1:
        rows_p, c_p = rows // g, g * c
        x2 = x.reshape(rows_p, c_p)                    # contiguous view, free
        w2 = jnp.tile(weight.reshape(1, c), (1, g))
        b2 = jnp.tile(bias.reshape(1, c), (1, g))
        kernel = functools.partial(_ln_lane_packed_kernel, eps=eps, c=c, g=g)
    else:
        rows_p, c_p = rows, c
        x2 = x.reshape(rows_p, c_p)                    # contiguous view, free
        w2 = weight.reshape(1, c)
        b2 = bias.reshape(1, c)
        kernel = functools.partial(_ln_lane_kernel, eps=eps, c=c)

    tr = _pick_row_tile(rows_p, c_p, itemsize, block_budget, num_cores)

    out = pl.pallas_call(
        kernel,
        out_shape=jax.ShapeDtypeStruct((rows_p, c_p), x.dtype),
        grid_spec=pltpu.PrefetchScalarGridSpec(
            num_scalar_prefetch=0,
            grid=(pl.cdiv(rows_p, tr),),
            in_specs=[
                pl.BlockSpec((tr, c_p), lambda i: (i, 0)),
                pl.BlockSpec((1, c_p), lambda i: (0, 0)),
                pl.BlockSpec((1, c_p), lambda i: (0, 0)),
            ],
            out_specs=pl.BlockSpec((tr, c_p), lambda i: (i, 0)),
        ),
        compiler_params=pltpu.CompilerParams(
            dimension_semantics=("parallel",),
            vmem_limit_bytes=vmem_limit,
        ),
    )(x2, w2, b2)
    return out.reshape(*lead, c)


def _layernorm_channels_first(x, weight, bias, eps):
    b, c, h, w = x.shape
    s = h * w
    x3 = x.reshape(b, c, s)                            # contiguous view, free (no transpose)
    itemsize = jnp.dtype(x.dtype).itemsize
    block_budget, vmem_limit, num_cores = _tpu_generation_params()
    ts = _pick_spatial_tile(s, c, itemsize, b, block_budget, num_cores)

    w2 = weight.reshape(c, 1)
    b2 = bias.reshape(c, 1)

    kernel = functools.partial(_ln_sublane_kernel, eps=eps)
    out = pl.pallas_call(
        kernel,
        out_shape=jax.ShapeDtypeStruct((b, c, s), x.dtype),
        grid_spec=pltpu.PrefetchScalarGridSpec(
            num_scalar_prefetch=0,
            grid=(b, pl.cdiv(s, ts)),
            in_specs=[
                # batch dim squeezed -> kernel sees a 2-D (C, TS) slab
                pl.BlockSpec((None, c, ts), lambda i, j: (i, 0, j)),
                pl.BlockSpec((c, 1), lambda i, j: (0, 0)),
                pl.BlockSpec((c, 1), lambda i, j: (0, 0)),
            ],
            out_specs=pl.BlockSpec((None, c, ts), lambda i, j: (i, 0, j)),
        ),
        compiler_params=pltpu.CompilerParams(
            dimension_semantics=("parallel", "parallel"),
            vmem_limit_bytes=vmem_limit,
        ),
    )(x3, w2, b2)
    return out.reshape(b, c, h, w)


def layer_norm(x, weight, bias, eps=1e-6, data_format="channels_last"):
    """Matches the PyTorch LayerNorm module forward().

    channels_last : x has shape (..., C); normalize over the last axis.
    channels_first: x has shape (B, C, H, W); normalize over axis 1.
    """
    if data_format not in ("channels_last", "channels_first"):
        raise NotImplementedError
    if data_format == "channels_last":
        return _layernorm_channels_last(x, weight, bias, eps)
    return _layernorm_channels_first(x, weight, bias, eps)


# ---------------------------------------------------------------------------
# Pure-JAX reference (mirrors the PyTorch module exactly)
# ---------------------------------------------------------------------------
def _reference(x, weight, bias, eps, data_format):
    if data_format == "channels_last":
        u = jnp.mean(x, axis=-1, keepdims=True)
        s = jnp.mean((x - u) ** 2, axis=-1, keepdims=True)
        xn = (x - u) / jnp.sqrt(s + eps)
        return weight * xn + bias
    else:
        u = jnp.mean(x, axis=1, keepdims=True)
        s = jnp.mean((x - u) ** 2, axis=1, keepdims=True)
        xn = (x - u) / jnp.sqrt(s + eps)
        return weight[None, :, None, None] * xn + bias[None, :, None, None]


if __name__ == "__main__":
    key = jax.random.PRNGKey(0)
    k1, k2, k3, k4, k5, kw1, kb1, kw2, kb2, kw3, kb3 = jax.random.split(key, 11)
    eps = 1e-6

    # --- channels_first (NCHW, like OverlapPatchEmbedding.out_norm), tiny C=4 ---
    C1 = 4
    w1 = 1.0 + 0.1 * jax.random.normal(kw1, (C1,), dtype=jnp.float32)
    b1 = 0.1 * jax.random.normal(kb1, (C1,), dtype=jnp.float32)
    x_cf = jax.random.normal(k1, (2, C1, 16, 16), dtype=jnp.float32)
    y_cf = jax.block_until_ready(layer_norm(x_cf, w1, b1, eps, "channels_first"))
    assert jnp.allclose(y_cf, _reference(x_cf, w1, b1, eps, "channels_first"),
                        atol=1e-4, rtol=1e-4)
    assert y_cf.shape == x_cf.shape and y_cf.dtype == x_cf.dtype

    # --- channels_first with a wider channel dim ---
    C2 = 128
    w2 = 1.0 + 0.1 * jax.random.normal(kw2, (C2,), dtype=jnp.float32)
    b2 = 0.1 * jax.random.normal(kb2, (C2,), dtype=jnp.float32)
    x_cf2 = jax.random.normal(k2, (2, C2, 8, 8), dtype=jnp.float32)
    y_cf2 = jax.block_until_ready(layer_norm(x_cf2, w2, b2, eps, "channels_first"))
    assert jnp.allclose(y_cf2, _reference(x_cf2, w2, b2, eps, "channels_first"),
                        atol=1e-4, rtol=1e-4)

    # --- channels_last (Block.norm / final nn.LayerNorm style), ragged row count ---
    x_cl = jax.random.normal(k3, (2, 7, 9, C2), dtype=jnp.float32)     # 126 rows
    y_cl = jax.block_until_ready(layer_norm(x_cl, w2, b2, eps, "channels_last"))
    assert jnp.allclose(y_cl, _reference(x_cl, w2, b2, eps, "channels_last"),
                        atol=1e-4, rtol=1e-4)
    assert y_cl.shape == x_cl.shape and y_cl.dtype == x_cl.dtype

    # --- channels_last with C=96 (ConvNeXt width, not a multiple of 128 -> packed path) ---
    C3 = 96
    w3 = 1.0 + 0.1 * jax.random.normal(kw3, (C3,), dtype=jnp.float32)
    b3 = 0.1 * jax.random.normal(kb3, (C3,), dtype=jnp.float32)
    x_p = jax.random.normal(k4, (2, 8, 8, C3), dtype=jnp.float32)      # 128 rows, g=4
    y_p = jax.block_until_ready(layer_norm(x_p, w3, b3, eps, "channels_last"))
    assert jnp.allclose(y_p, _reference(x_p, w3, b3, eps, "channels_last"),
                        atol=2e-3, rtol=2e-3)
    assert y_p.shape == x_p.shape and y_p.dtype == x_p.dtype

    # --- channels_last with bf16 activations (f32 statistics inside the kernel) ---
    x_bf = jax.random.normal(k5, (2, 16, 16, C2), dtype=jnp.float32).astype(jnp.bfloat16)
    y_bf = jax.block_until_ready(layer_norm(x_bf, w2, b2, eps, "channels_last"))
    ref_bf = _reference(x_bf.astype(jnp.float32), w2, b2, eps, "channels_last")
    assert y_bf.dtype == jnp.bfloat16
    assert jnp.allclose(y_bf.astype(jnp.float32), ref_bf, atol=5e-2, rtol=5e-2)

    print("KERNEL_OK")
</pallas_src>

<mosaic_0001>
module attributes {stable_mosaic.version = 11 : i64} {
  func.func @_ln_sublane_kernel(%arg0: i32, %arg1: i32, %arg2: memref<1x4x128xf32, #tpu.memory_space<vmem>>, %arg3: memref<4x1xf32, #tpu.memory_space<vmem>>, %arg4: memref<4x1xf32, #tpu.memory_space<vmem>>, %arg5: memref<1x4x128xf32, #tpu.memory_space<vmem>>) attributes {dimension_semantics = [#tpu.dimension_semantics<parallel>, #tpu.dimension_semantics<parallel>], iteration_bounds = array<i64: 2, 2>, scalar_prefetch = 0 : i64, scratch_operands = 0 : i64, tpu.core_type = #tpu.core_type<tc>, window_params = [{transform_indices = @transform_0, window_bounds = array<i64: 1, 4, 128>}, {pipeline_mode = #tpu.pipeline_mode<synchronous>, transform_indices = @transform_1, window_bounds = array<i64: 4, 1>}, {pipeline_mode = #tpu.pipeline_mode<synchronous>, transform_indices = @transform_2, window_bounds = array<i64: 4, 1>}, {transform_indices = @transform_3, window_bounds = array<i64: 1, 4, 128>}]} {
    %c0 = arith.constant 0 : index
    %c0_0 = arith.constant 0 : index
    %c0_1 = arith.constant 0 : index
    %0 = vector.load %arg2[%c0, %c0_0, %c0_1] : memref<1x4x128xf32, #tpu.memory_space<vmem>>, vector<1x4x128xf32>
    %1 = vector.shape_cast %0 : vector<1x4x128xf32> to vector<4x128xf32>
    %cst = arith.constant dense<0.000000e+00> : vector<128xf32>
    %2 = vector.multi_reduction <add>, %1, %cst [0] : vector<4x128xf32> to vector<128xf32>
    %3 = vector.shape_cast %2 : vector<128xf32> to vector<1x128xf32>
    %cst_2 = arith.constant 4.000000e+00 : f32
    %4 = vector.broadcast %cst_2 : f32 to vector<1x128xf32>
    %5 = arith.divf %3, %4 : vector<1x128xf32>
    %6 = vector.broadcast %5 : vector<1x128xf32> to vector<4x128xf32>
    %7 = arith.subf %1, %6 : vector<4x128xf32>
    %8 = arith.mulf %7, %7 : vector<4x128xf32>
    %cst_3 = arith.constant dense<0.000000e+00> : vector<128xf32>
    %9 = vector.multi_reduction <add>, %8, %cst_3 [0] : vector<4x128xf32> to vector<128xf32>
    %10 = vector.shape_cast %9 : vector<128xf32> to vector<1x128xf32>
    %cst_4 = arith.constant 4.000000e+00 : f32
    %11 = vector.broadcast %cst_4 : f32 to vector<1x128xf32>
    %12 = arith.divf %10, %11 : vector<1x128xf32>
    %cst_5 = arith.constant 9.99999997E-7 : f32
    %13 = vector.broadcast %cst_5 : f32 to vector<1x128xf32>
    %14 = arith.addf %12, %13 : vector<1x128xf32>
    %15 = math.rsqrt %14 : vector<1x128xf32>
    %c0_6 = arith.constant 0 : index
    %c0_7 = arith.constant 0 : index
    %16 = vector.load %arg3[%c0_6, %c0_7] : memref<4x1xf32, #tpu.memory_space<vmem>>, vector<4x1xf32>
    %c0_8 = arith.constant 0 : index
    %c0_9 = arith.constant 0 : index
    %17 = vector.load %arg4[%c0_8, %c0_9] : memref<4x1xf32, #tpu.memory_space<vmem>>, vector<4x1xf32>
    %18 = vector.broadcast %15 : vector<1x128xf32> to vector<4x128xf32>
    %19 = arith.mulf %7, %18 : vector<4x128xf32>
    %20 = vector.broadcast %16 : vector<4x1xf32> to vector<4x128xf32>
    %21 = arith.mulf %19, %20 : vector<4x128xf32>
    %22 = vector.broadcast %17 : vector<4x1xf32> to vector<4x128xf32>
    %23 = arith.addf %21, %22 : vector<4x128xf32>
    %c0_10 = arith.constant 0 : index
    %c0_11 = arith.constant 0 : index
    %c0_12 = arith.constant 0 : index
    %24 = vector.load %arg5[%c0_10, %c0_11, %c0_12] : memref<1x4x128xf32, #tpu.memory_space<vmem>>, vector<1x4x128xf32>
    %25 = vector.shape_cast %24 : vector<1x4x128xf32> to vector<4x128xf32>
    %26 = vector.shape_cast %23 : vector<4x128xf32> to vector<1x4x128xf32>
    tpu.vector_store %arg5[%c0_10, %c0_11, %c0_12], %26 {strides = array<i32>} : memref<1x4x128xf32, #tpu.memory_space<vmem>>, vector<1x4x128xf32>,
    return
  }
  func.func @transform_0(%arg0: i32, %arg1: i32) -> (i32, i32, i32) {
    %c0_i32 = arith.constant 0 : i32
    %c0_i32_0 = arith.constant 0 : i32
    return %arg0, %c0_i32, %arg1 : i32, i32, i32
  }
  func.func @transform_1(%arg0: i32, %arg1: i32) -> (i32, i32) {
    %c0_i32 = arith.constant 0 : i32
    %c0_i32_0 = arith.constant 0 : i32
    %c0_i32_1 = arith.constant 0 : i32
    return %c0_i32, %c0_i32_0 : i32, i32
  }
  func.func @transform_2(%arg0: i32, %arg1: i32) -> (i32, i32) {
    %c0_i32 = arith.constant 0 : i32
    %c0_i32_0 = arith.constant 0 : i32
    %c0_i32_1 = arith.constant 0 : i32
    return %c0_i32, %c0_i32_0 : i32, i32
  }
  func.func @transform_3(%arg0: i32, %arg1: i32) -> (i32, i32, i32) {
    %c0_i32 = arith.constant 0 : i32
    %c0_i32_0 = arith.constant 0 : i32
    return %arg0, %c0_i32, %arg1 : i32, i32, i32
  }
}

</mosaic_0001>

<bundles_post_ra>
// kernel: tpu_custom_call.1
= control target key start
LH: loop header
LB: loop body
LE: loop exit
PB: predicated region body
PF: predicated region fallthrough
CT: control target
= control target key end

     0   :  { %8 = vsyncpa [#allocation3], 0  ;;  %s769_s0 = inlined_call_operand.hbm [shape: f32[2,4,256], index: 0, kind: input, shape index: {}]   ;;  %s770_s1 = inlined_call_operand.vmem [shape: f32[4,1], index: 1, kind: input, shape index: {}]   ;;  %s771_s2 = inlined_call_operand.vmem [shape: f32[4,1], index: 2, kind: input, shape index: {}]   ;;  %s772_s3 = inlined_call_operand.hbm [shape: f32[2,4,256], index: 3, kind: output, shape index: {}]  }
   0x1   :  { %10 = vsyncpa [#allocation3 + $0x1], 0 }
   0x2   :  { %11 = vsyncpa [#allocation4], 0 }
   0x3   :  { %13 = vsyncpa [#allocation4 + $0x1], 0  ;;  %s615_s12 = smov 0   ;;  %s617_s13 = smov 0  }
   0x4   :  { %s619_s14 = smov 0   ;;  %s621_s15 = smov 0  }
   0x5   :  { %s623_s16 = smov 0   ;;  %s625_s17 = smov 0  }
   0x6   :  { %s627_s18 = smov 0   ;;  %s629_s19 = smov 0  }
   0x7 LB: > { %s363_s20 = sadd.s32 4294967295, %s591_s19   ;;  %s364_s21 = sadd.s32 4294967294, %s591_s19   ;;  %s591_s19 = sphi %s629_s19, %s19_s19   ;;  %s587_s18 = sphi %s627_s18, %s786_s18   ;;  %s583_s17 = sphi %s625_s17, %s785_s17   ;;  %s579_s16 = sphi %s623_s16, %s784_s16   ;;  %s575_s15 = sphi %s621_s15, %s783_s15   ;;  %s571_s14 = sphi %s619_s14, %s782_s14   ;;  %s567_s13 = sphi %s617_s13, %s781_s13   ;;  %s563_s12 = sphi %s615_s12, %s780_s12  }
   0x8   : > { %s28_s22 = sadd.s32 1, %s583_s17  ;;  %s31_s23 = sadd.s32 1, %s587_s18 }
   0x9   : > { %p29_p0 = scmp.ge.s32.totalorder %s28_s22, 2  ;;  %s40_s24 = sadd.s32 1, %s571_s14 }
   0xa   : > { %p47_p1 = scmp.ne.s32.totalorder %s571_s14, %s567_s13  ;;  %p48_p2 = scmp.eq.s32.totalorder %s591_s19, 0 }
   0xb   : > { %s788_s22 = smov (%p29_p0, %s28_s22), 0  ;;  %s790_s23 = smov (!%p29_p0, %s31_s23), %s587_s18 }
   0xc   : > { %s36_s25 = ssub.s32 %s583_s17, %s788_s22  ;;  %p668_p3 = por %p48_p2, %p47_p1 }
   0xd   : > { %p33_p4 = scmp.ge.s32.totalorder %s790_s23, 2  ;;  %p53_p5 = scmp.ne.s32.totalorder %s567_s13, %s563_s12 }
   0xe   : > { %p54_p6 = scmp.eq.s32.totalorder %s363_s20, 0  ;;  %p121_p7 = scmp.eq.s32.totalorder %s363_s20, 3 }
   0xf   : > { %s792_s23 = smov (%p33_p4, %s790_s23), 0  ;;  %p127_p10 = scmp.eq.s32.totalorder %s364_s21, 3 }
  0x10   : > { %775 = sst [smem:[#allocation8_spill]] %s792_s23  ;;  %p676_p8 = por %p54_p6, %p53_p5 }
  0x11   : > { %p680_p9 = por %p121_p7, %p47_p1  ;;  %s35_s29 = ssub.s32 %s587_s18, %s792_s23 }
  0x12   : > { %s37_s30 = sor.u32 %s36_s25, %s35_s29  ;;  %p686_p12 = por %p127_p10, %p53_p5 }
  0x13   : > { %p38_p11 = scmp.eq.s32.totalorder %s37_s30, 0  ;;  %p390_p13 = scmp.lt.s32.totalorder %s591_s19, 4 }
  0x14   : > { %s153_s5 = sand.u32 1, %s571_s14   ;;  %s368_s8 = sshll.u32 %s587_s18, 1 }
  0x15   : > { %s693_s6 = scalar_select %p38_p11, %s571_s14, %s40_s24  }
  0x16   : > { %s367_s7 = sshll.u32 %s153_s5, 2  ;;  %s161_s9 = sadd.s32 %s583_s17, %s368_s8 }
  0x17   : > { %s157_s10 = scalar_lea.vmem [#allocation2], %s367_s7  ;;  %s369_s20 = sshll.u32 %s161_s9, 2 }
  0x18   : > { %s167_s11 = sshll.u32 %s157_s10, 4  ;;  %s163_s29 = scalar_lea.hbm %s769_s0, %s369_s20  ;;  %s168_s11 = int_to_ptr.vmem [resolvable:$true] %s167_s11 }
  0x19   : > { %p383_p0 = pnand %p390_p13, %p668_p3  ;;  %s165_s30 = sshll.u32 %s163_s29, 4  ;;  %s166_s30 = int_to_ptr.hbm [resolvable:$true] %s165_s30 }
  0x1a   : > { %p370_p1 = scmp.ge.s32.totalorder %s591_s19, 1  ;;  %s154_s23 = scalar_lea.sflag [#allocation3], %s153_s5 }
  0x1b   : > { %385 = dma.hbm_to_vmem [thread:$0]  (!%p383_p0), %s166_s30, 64, %s168_s11, %s154_s23  }
  0x1c   : > { %p172_p2 = scmp.lt.s32.totalorder %s591_s19, 5 }
  0x1e   : > { %p173_p4 = pnand %p370_p1, %p172_p2 }
  0x1f   : > { %s705_s24 = sand.u32 (!%p173_p4), 1, %s567_s13  }
  0x20   : > { %176 = sbr.rel (%p173_p4) target bundleno = 168 (0xa8), region = 32  ;;  %s371_s7 = sshll.u32 (!%p173_p4), %s705_s24, 2 }
  0x21   : > { %s179_s8 = scalar_lea.sflag (!%p173_p4), [#allocation3], %s705_s24  ;;  %s182_s26 = scalar_lea.vmem (!%p173_p4), [#allocation2], %s371_s7 }
  0x25   : > { %554 = dma.done.wait (%p676_p8), %s179_s8, 64  }
  0x26   : > { %556 = vsyncadd (%p676_p8), %s179_s8, 4294967232  ;;  %v593_v0 = vmov 0   ;;  %v244_v1 = vld [vmem:[%s770_s1] sm:$0xf]  ;;  %v594_v3 = vmov 4.0   ;;  %vm207_vm0 = vcmask 1043456  }
  0x27   : > { %458 = vset.pattern.permute.xlu0 %v593_v0  ;;  %v245_v2 = vld [vmem:[%s771_s2] sm:$0xf]  ;;  %459 = vrcp.f32 %v594_v3  ;;  %s374_s27 = sshll.u32 %s579_s16, 1  ;;  %s205_s30 = scalar_lea.vmem [#allocation5], %s371_s7 }
  0x28   : > { %249 = vperm.xlu0 %458, %v244_v1   ;;  %v206_v7 = vld [vmem:[%s182_s26] sm:$0xf]  ;;  %s271_s11 = sadd.s32 %s575_s15, %s374_s27  ;;  %s275_s8 = sshll.u32 %s205_s30, 4  ;;  %s276_s8 = int_to_ptr.vmem [resolvable:$true] %s275_s8 }
  0x29   : > { %v208_v8 = vsel %vm207_vm0, %v206_v7, 0.0  ;;  %s375_s20 = sshll.u32 %s271_s11, 2  ;;  %s261_s15 = scalar_lea.sflag [#allocation4], %s705_s24 }
  0x2a   : > { %v209_v9 = vrot.slane %v208_v8, 4  ;;  %s273_s29 = scalar_lea.hbm %s772_s3, %s375_s20  ;;  %s513_s7 = scalar_lea.hbm %s772_s3, 16 }
  0x2b   : > { %s277_s26 = sshll.u32 %s273_s29, 4  ;;  %s278_s26 = int_to_ptr.hbm [resolvable:$true] %s277_s26 }
  0x2c   : > { %v210_v11 = vadd.f32 %v209_v9, %v208_v8  ;;  %s507_s16 = sshra.s32 %s278_s26, 4  ;;  %s508_s16 = int_to_ptr.hbm [resolvable:$true] %s507_s16 }
  0x2d   : > { %v460_v4 = vpop.eup %459  ;;  %s509_s23 = scalar_lea.hbm %s508_s16, 4  ;;  %p514_p7 = scmp.lt.s32.totalorder %s508_s16, %s772_s3 }
  0x2e   : > { %v216_v5 = vmul.f32 4.0, %v460_v4  ;;  %v211_v12 = vrot.slane %v210_v11, 2  ;;  %vm220_vm1 = vweird.f32 %v460_v4  ;;  %p510_p3 = scmp.ne.s32.totalorder %s508_s16, %s509_s23  ;;  %p515_p8 = scmp.lt.s32.totalorder %s513_s7, %s509_s23 }
  0x30   : > { %255 = vperm.xlu0 %458, %v245_v2   ;;  %v217_v6 = vsub.f32 1.0, %v216_v5  ;;  %v212_v14 = vadd.f32 %v211_v12, %v210_v11  ;;  %p511_p5 = pnand %p510_p3, %p680_p9  ;;  %p516_p10 = por %p515_p8, %p514_p7 }
  0x32   : > { %v218_v10 = vmul.f32 %v460_v4, %v217_v6  ;;  %v213_v15 = vrot.slane %v212_v14, 1  ;;  %p512_p6 = pneg %p511_p5 }
  0x34   : > { %v219_v13 = vadd.f32 %v460_v4, %v218_v10  ;;  %v214_v17 = vadd.f32 %v213_v15, %v212_v14  ;;  %p517_p11 = pnand %p516_p10, %p512_p6 }
  0x36   : > { %v221_v16 = vsel %vm220_vm1, %v460_v4, %v219_v13 }
  0x37   : > { %v222_v18 = vmul.f32 %v221_v16, %v214_v17 }
  0x39   : > { %v223_v19 = vsub.f32 %v206_v7, %v222_v18 }
  0x3b   : > { %v224_v20 = vmul.f32 %v223_v19, %v223_v19 }
  0x3d   : > { %v225_v21 = vsel %vm207_vm0, %v224_v20, 0.0 }
  0x3e   : > { %v226_v22 = vrot.slane %v225_v21, 4 }
  0x40   : > { %v227_v23 = vadd.f32 %v226_v22, %v225_v21 }
  0x42   : > { %v228_v24 = vrot.slane %v227_v23, 2 }
  0x44   : > { %v229_v25 = vadd.f32 %v228_v24, %v227_v23 }
  0x46   : > { %v230_v26 = vrot.slane %v229_v25, 1 }
  0x48   : > { %v231_v27 = vadd.f32 %v230_v26, %v229_v25 }
  0x4a   : > { %v232_v28 = vmul.f32 %v231_v27, %v221_v16 }
  0x4c   : > { %v233_v29 = vadd.f32 1e-06, %v232_v28 }
  0x4e   : > { %461 = vrsqrt.f32 %v233_v29  ;;  %vm240_vm2 = vweird.f32 %v233_v29 }
  0x54   : > { %v462_v30 = vpop.eup %461 }
  0x55   : > { %v235_v31 = vmul.f32 %v462_v30, %v233_v29  ;;  %vm241_vm3 = vweird.f32 %v462_v30 }
  0x56   : > { %vm242_vm4 = vmor %vm240_vm2, %vm241_vm3 }
  0x57   : > { %v236_v32 = vmul.f32 %v462_v30, %v235_v31 }
  0x59   : > { %v237_v33 = vmul.f32 0.5, %v236_v32 }
  0x5b   : > { %v238_v34 = vsub.f32 1.5, %v237_v33 }
  0x5d   : > { %v239_v35 = vmul.f32 %v462_v30, %v238_v34 }
  0x5f   : > { %v243_v37 = vsel %vm242_vm4, %v462_v30, %v239_v35 }
  0x60   : > { %v246_v38 = vmul.f32 %v243_v37, %v223_v19 }
  0x9a   : > { %v250_v36 = vpop.permute.xlu0 %249 }
  0x9b   : > { %v252_v39 = vmul.f32 %v250_v36, %v246_v38 }
  0xa2   : > { %v256_v40 = vpop.permute.xlu0 %255 }
  0xa3   : > { %v258_v41 = vadd.f32 %v256_v40, %v252_v39 }
  0xa5   : > { %259 = vst [vmem:[%s205_s30] sm:$0xf] %v258_v41 }
  0xa6   : > { %520 = shalt.err (!%p517_p11)
}
  0xa7   : > { %380 = dma.vmem_to_hbm [thread:$0]  (%p680_p9), %s276_s8, 64, %s278_s26, %s261_s15  }
  0xa8 PF: > { %p391_p13 = scmp.ge.s32.totalorder %s591_s19, 2  ;;  %s289_s24 = sand.u32 1, %s563_s12  }
  0xa9   : > { %s290_s11 = scalar_lea.sflag [#allocation4], %s289_s24 }
  0xaa   : > { %p387_p0 = pnand %p391_p13, %p686_p12 }
  0xac   : > { %p388_p1 = pneg %p387_p0 }
  0xae   : > { %558 = dma.done.wait (%p388_p1), %s290_s11, 64  }
  0xaf   : > { %560 = vsyncadd (%p388_p1), %s290_s11, 4294967232  ;;  %s19_s19 = sadd.s32 1, %s591_s19   ;;  %s779_s28 = sld [smem:[#allocation8_spill]] }
  0xb0   : > { %p16_p2 = scmp.ge.s32.totalorder %s19_s19, 6   ;;  %s780_s12 = smov %s567_s13 }
  0xb1   : > { %s781_s13 = smov %s571_s14  ;;  %s782_s14 = smov %s693_s6 }
  0xb2   : > { %s783_s15 = smov %s583_s17  ;;  %s784_s16 = smov %s587_s18 }
  0xb3   : > { %s785_s17 = smov %s788_s22  ;;  %18 = sbr.rel (!%p16_p2) target bundleno = 7 (0x7), region = 77 }
  0xb5   : > { %s786_s18 = smov %s779_s28 }
  0xb8   :  { %296 = vsyncpa [#allocation3], 1 }
  0xb9   :  { %298 = vsyncpa [#allocation3 + $0x1], 1 }
  0xba   :  { %299 = vsyncpa [#allocation4], 1 }
  0xbb   :  { %301 = vsyncpa [#allocation4 + $0x1], 1 }

</bundles_post_ra>
